<compile_context>
chip_gen: v5e
topology: v5e:2x2
jax: 0.10.0
libtpu: 0.0.40
codegen_flags: <defaults>
</compile_context>

<pallas_src>
import functools
import math

import jax
import jax.numpy as jnp
from jax.experimental import pallas as pl
from jax.experimental.pallas import tpu as pltpu


def _rmsnorm_kernel(x_ref, scale_ref, o_ref, *, inv_d: float, eps: float):
    """General path: lane axis == d_model.  x_ref: (row_tile, d_model)."""
    x = x_ref[...].astype(jnp.float32)
    ssq = jnp.sum(x * x, axis=-1, keepdims=True)             # (T, 1)
    rms = jnp.sqrt(ssq * inv_d)                               # (T, 1)
    inv = 1.0 / (rms + eps)                                   # exact per-row divide
    scale = scale_ref[...].astype(jnp.float32)                # (1, d_model)
    o_ref[...] = (x * inv * scale).astype(o_ref.dtype)


def _rmsnorm_kernel_packed(x_ref, scale_ref, gmat_ref, o_ref, *, eps: float):
    """Lane-dense path: each packed row holds k logical rows (width = k*d_model).

    gmat is block-diagonal with entries 1/d_model, so (x*x) @ gmat directly
    broadcasts each logical row's mean(x^2) across that row's own lanes; the
    whole tile stays lane-dense (no reshapes, no masked partial stores) and
    the /d_model never touches the broadcast tile.  Keep everything f32 —
    bf16 rounding of the squares breaks the 1e-5 parity with the reference.
    """
    x = x_ref[...].astype(jnp.float32)                        # (T, width)
    msq = jnp.dot(x * x, gmat_ref[...],
                  preferred_element_type=jnp.float32)         # (T, width) = mean(x^2)
    rms = jnp.sqrt(msq)
    scale = scale_ref[...].astype(jnp.float32)                # (1, width)
    o_ref[...] = (x / (rms + eps) * scale).astype(o_ref.dtype)


def _vmem_capacity_bytes() -> int:
    try:
        cap = getattr(pltpu.get_tpu_info(), "vmem_capacity_bytes", None)
        if cap:
            return int(cap)
    except Exception:
        pass
    return 128 << 20  # v5e / v6e


def simple_rms_norm(x: jax.Array, scale: jax.Array, eps: float = 1e-8,
                    row_tile=None) -> jax.Array:
    """RMSNorm over the last axis of x, matching SimpleRMSNorm.forward."""
    d_model = x.shape[-1]
    assert scale.shape == (d_model,)
    orig_shape = x.shape
    orig_dtype = x.dtype
    rows = int(math.prod(orig_shape[:-1])) if len(orig_shape) > 1 else 1
    x2d = x.reshape(rows, d_model)

    itemsize = jnp.dtype(orig_dtype).itemsize
    min_rows = 8 if itemsize >= 4 else (16 if itemsize == 2 else 32)

    # Lane-dense packing: fold k consecutive rows into one packed row so the
    # kernel's lane axis is a multiple of 128 (full vregs, unmasked vst).
    k = 1
    if d_model % 128 != 0:
        k_cand = 128 // math.gcd(d_model, 128)
        if k_cand * d_model <= 1024:
            k = k_cand
    width = k * d_model

    # Per-generation budgets (v7x: 64 MiB VMEM/TC -> smaller blocks, lower cap).
    small_vmem = _vmem_capacity_bytes() <= (96 << 20)
    block_target = (2 << 20) if small_vmem else (4 << 20)
    block_max = (4 << 20) if small_vmem else (8 << 20)
    vmem_cap = (32 << 20) if small_vmem else (48 << 20)

    # Pad rows only up to a multiple of k (<= k-1 rows), with a one-tile floor
    # for very small inputs so the packed slab has >= 8 sublanes.  Padded zero
    # rows are harmless: 0 / (0 + eps) == 0.
    rows_padded = max(pl.cdiv(rows, k) * k, k * min_rows)
    packed_rows = rows_padded // k
    if rows_padded != rows:
        x2d = jnp.pad(x2d, ((0, rows_padded - rows), (0, 0)))
    xp = x2d.reshape(packed_rows, width)

    # Row tile (in packed rows): sized by the f32 in-kernel footprint (budgets
    # the upcast of sub-32-bit inputs), capped at ~half the data so the grid
    # has >= 2 steps for v7x's two TensorCores.
    row_bytes_f32 = width * 4
    if row_tile is None:
        row_tile = block_target // row_bytes_f32
    max_rows = max(min_rows, block_max // row_bytes_f32)
    half = pl.cdiv(pl.cdiv(packed_rows, 2), min_rows) * min_rows
    row_tile = min(int(row_tile), int(max_rows), int(half))
    row_tile = max(min_rows, (row_tile // min_rows) * min_rows)

    # Ragged last block (packed_rows % row_tile != 0) is fine: RMS is row-local
    # and Pallas masks the out-of-bounds stores of the final block.
    grid = pl.cdiv(packed_rows, row_tile)

    # Scoped-VMEM budget: double-buffered in/out blocks + ~3 f32-sized
    # intermediates + (double-buffered) scale/gmat constants + headroom.
    io_block = row_tile * width * itemsize
    f32_block = row_tile * width * 4
    const_bytes = 2 * width * 4 + (2 * width * width * 4 if k > 1 else 0)
    vmem_limit = int(min(max(4 * io_block + 3 * f32_block + const_bytes
                             + (2 << 20), 16 << 20), vmem_cap))

    flops = 4 * packed_rows * width
    transcendentals = 2 * packed_rows * (width if k > 1 else 1)
    bytes_accessed = 2 * packed_rows * width * itemsize + width * 4
    if k > 1:
        flops += 2 * packed_rows * width * width         # block-diag MXU matmul
        bytes_accessed += width * width * 4               # gmat fetch
    cost = pl.CostEstimate(flops=flops, transcendentals=transcendentals,
                           bytes_accessed=bytes_accessed)

    x_spec = pl.BlockSpec((row_tile, width), lambda i: (i, 0))
    if k > 1:
        kernel = functools.partial(_rmsnorm_kernel_packed, eps=eps)
        scale_in = jnp.tile(scale.astype(jnp.float32), k).reshape(1, width)
        lane = jnp.arange(width) // d_model
        gmat = jnp.where(lane[:, None] == lane[None, :],
                         jnp.float32(1.0 / d_model), jnp.float32(0.0))
        in_specs = [x_spec,
                    pl.BlockSpec((1, width), lambda i: (0, 0)),
                    pl.BlockSpec((width, width), lambda i: (0, 0))]
        operands = (xp, scale_in, gmat)
    else:
        kernel = functools.partial(_rmsnorm_kernel, inv_d=1.0 / d_model, eps=eps)
        scale_in = scale.astype(jnp.float32).reshape(1, width)
        in_specs = [x_spec, pl.BlockSpec((1, width), lambda i: (0, 0))]
        operands = (xp, scale_in)

    out = pl.pallas_call(
        kernel,
        out_shape=jax.ShapeDtypeStruct((packed_rows, width), orig_dtype),
        grid_spec=pltpu.PrefetchScalarGridSpec(
            num_scalar_prefetch=0,
            grid=(grid,),
            in_specs=in_specs,
            out_specs=pl.BlockSpec((row_tile, width), lambda i: (i, 0)),
        ),
        compiler_params=pltpu.CompilerParams(
            dimension_semantics=("parallel",),
            vmem_limit_bytes=vmem_limit),
        cost_estimate=cost,
    )(*operands)

    out2d = out.reshape(rows_padded, d_model)
    if rows_padded != rows:
        out2d = out2d[:rows]          # slice (a copy) only when we actually padded
    return out2d.reshape(orig_shape)


if __name__ == "__main__":
    # Shapes implied by the module: x = [batch, seq, d_model] = [2, 8, 32].
    d_model = 32
    eps = 1e-8

    # Deterministic parameter init exactly as in __init__: torch.ones(d_model)
    scale = jnp.ones((d_model,), dtype=jnp.float32)

    def reference(x):
        rms = jnp.linalg.norm(x.astype(jnp.float32), axis=-1,
                              keepdims=True) / math.sqrt(d_model)
        return (x / (rms + eps) * scale).astype(x.dtype)

    key = jax.random.PRNGKey(0)
    k1, k2 = jax.random.split(key)

    x = jax.random.normal(k1, (2, 8, d_model), dtype=jnp.float32)
    out = jax.block_until_ready(simple_rms_norm(x, scale, eps=eps))
    assert out.shape == x.shape and out.dtype == x.dtype
    assert jnp.allclose(out, reference(x), atol=1e-5, rtol=1e-5)

    # Non-divisible row count: exercises the ragged last grid block
    # (packed_rows not a multiple of row_tile) with no host-side pad/slice.
    x2 = jax.random.normal(k2, (2, 100, d_model), dtype=jnp.float32)
    out2 = jax.block_until_ready(simple_rms_norm(x2, scale, eps=eps))
    assert out2.shape == x2.shape and out2.dtype == x2.dtype
    assert jnp.allclose(out2, reference(x2), atol=1e-5, rtol=1e-5)

    print("KERNEL_OK")
</pallas_src>

<mosaic_0001>
module attributes {stable_mosaic.version = 11 : i64} {
  func.func @_rmsnorm_kernel_packed(%arg0: i32, %arg1: memref<8x128xf32, #tpu.memory_space<vmem>>, %arg2: memref<1x128xf32, #tpu.memory_space<vmem>>, %arg3: memref<128x128xf32, #tpu.memory_space<vmem>>, %arg4: memref<8x128xf32, #tpu.memory_space<vmem>>) attributes {dimension_semantics = [#tpu.dimension_semantics<parallel>], iteration_bounds = array<i64: 1>, scalar_prefetch = 0 : i64, scratch_operands = 0 : i64, tpu.core_type = #tpu.core_type<tc>, window_params = [{transform_indices = @transform_0, window_bounds = array<i64: 8, 128>}, {pipeline_mode = #tpu.pipeline_mode<synchronous>, transform_indices = @transform_1, window_bounds = array<i64: 1, 128>}, {pipeline_mode = #tpu.pipeline_mode<synchronous>, transform_indices = @transform_2, window_bounds = array<i64: 128, 128>}, {transform_indices = @transform_3, window_bounds = array<i64: 8, 128>}]} {
    %c0 = arith.constant 0 : index
    %c0_0 = arith.constant 0 : index
    %0 = vector.load %arg1[%c0, %c0_0] : memref<8x128xf32, #tpu.memory_space<vmem>>, vector<8x128xf32>
    %1 = arith.mulf %0, %0 : vector<8x128xf32>
    %c0_1 = arith.constant 0 : index
    %c0_2 = arith.constant 0 : index
    %2 = vector.load %arg3[%c0_1, %c0_2] : memref<128x128xf32, #tpu.memory_space<vmem>>, vector<128x128xf32>
    %cst = arith.constant dense<0.000000e+00> : vector<8x128xf32>
    %3 = tpu.matmul %1, %2, %cst {dimension_numbers = #tpu.dot_dimension_numbers<[1], [0], [0], [1], [0, 0, 1, 1], [], []>} : vector<8x128xf32>, vector<128x128xf32>, vector<8x128xf32> -> vector<8x128xf32>
    %4 = math.sqrt %3 : vector<8x128xf32>
    %c0_3 = arith.constant 0 : index
    %c0_4 = arith.constant 0 : index
    %5 = vector.load %arg2[%c0_3, %c0_4] : memref<1x128xf32, #tpu.memory_space<vmem>>, vector<1x128xf32>
    %cst_5 = arith.constant 9.99999993E-9 : f32
    %6 = vector.broadcast %cst_5 : f32 to vector<8x128xf32>
    %7 = arith.addf %4, %6 : vector<8x128xf32>
    %8 = arith.divf %0, %7 : vector<8x128xf32>
    %9 = vector.broadcast %5 : vector<1x128xf32> to vector<8x128xf32>
    %10 = arith.mulf %8, %9 : vector<8x128xf32>
    %c0_6 = arith.constant 0 : index
    %c0_7 = arith.constant 0 : index
    %11 = vector.load %arg4[%c0_6, %c0_7] : memref<8x128xf32, #tpu.memory_space<vmem>>, vector<8x128xf32>
    tpu.vector_store %arg4[%c0_6, %c0_7], %10 {strides = array<i32>} : memref<8x128xf32, #tpu.memory_space<vmem>>, vector<8x128xf32>,
    return
  }
  func.func @transform_0(%arg0: i32) -> (i32, i32) {
    %c0_i32 = arith.constant 0 : i32
    %c0_i32_0 = arith.constant 0 : i32
    return %arg0, %c0_i32 : i32, i32
  }
  func.func @transform_1(%arg0: i32) -> (i32, i32) {
    %c0_i32 = arith.constant 0 : i32
    %c0_i32_0 = arith.constant 0 : i32
    %c0_i32_1 = arith.constant 0 : i32
    return %c0_i32, %c0_i32_0 : i32, i32
  }
  func.func @transform_2(%arg0: i32) -> (i32, i32) {
    %c0_i32 = arith.constant 0 : i32
    %c0_i32_0 = arith.constant 0 : i32
    %c0_i32_1 = arith.constant 0 : i32
    return %c0_i32, %c0_i32_0 : i32, i32
  }
  func.func @transform_3(%arg0: i32) -> (i32, i32) {
    %c0_i32 = arith.constant 0 : i32
    %c0_i32_0 = arith.constant 0 : i32
    return %arg0, %c0_i32 : i32, i32
  }
}

</mosaic_0001>

<bundles_post_ra>
// kernel: tpu_custom_call.1
= control target key start
LH: loop header
LB: loop body
LE: loop exit
PB: predicated region body
PF: predicated region fallthrough
CT: control target
= control target key end

     0   :  { %8 = vsyncpa [#allocation3], 0  ;;  %s299_s0 = inlined_call_operand.hbm [shape: f32[8,128], index: 0, kind: input, shape index: {}]   ;;  %s300_s1 = inlined_call_operand.hbm [shape: f32[1,128], index: 1, kind: input, shape index: {}]   ;;  %s301_s2 = inlined_call_operand.hbm [shape: f32[128,128], index: 2, kind: input, shape index: {}]   ;;  %s302_s3 = inlined_call_operand.hbm [shape: f32[8,128], index: 3, kind: output, shape index: {}]  }
   0x1   :  { %9 = vsyncpa [#allocation6], 0  ;;  %s27_s14 = sshll.u32 %s300_s1, 4  ;;  %s28_s14 = int_to_ptr.hbm [resolvable:$true] %s27_s14 }
   0x2   :  { %10 = vsyncpa [#allocation4], 0  ;;  %s261_s15 = smov [#allocation5]   ;;  %s16_s19 = sshll.u32 %s299_s0, 4  ;;  %s17_s19 = int_to_ptr.hbm [resolvable:$true] %s16_s19 }
   0x3   :  { %s29_s16 = sshll.u32 %s261_s15, 4  ;;  %s262_s20 = smov [#allocation2]   ;;  %s30_s16 = int_to_ptr.vmem [resolvable:$true] %s29_s16 }
   0x4   :  { %32 = dma.hbm_to_vmem [thread:$0]  %s28_s14, 16, %s30_s16, [#allocation6]  }
   0x5   :  { %s18_s21 = sshll.u32 %s262_s20, 4  ;;  %s37_s24 = sshll.u32 %s301_s2, 4  ;;  %s19_s21 = int_to_ptr.vmem [resolvable:$true] %s18_s21  ;;  %s38_s24 = int_to_ptr.hbm [resolvable:$true] %s37_s24 }
   0x6   :  { %21 = dma.hbm_to_vmem [thread:$0]  %s17_s19, 128, %s19_s21, [#allocation3]  }
   0x7   :  { %s263_s1 = smov [#allocation7]   ;;  %s264_s26 = smov 128  }
   0x8   :  { %s39_s25 = sshll.u32 %s263_s1, 4  ;;  %s265_s27 = smov 8   ;;  %s40_s25 = int_to_ptr.vmem [resolvable:$true] %s39_s25 }
   0x9   :  { %45 = dma.hbm_to_vmem [thread:$0]  %s38_s24, 2048, %s40_s25, [#allocation6], %s264_s26, %s264_s26, %s265_s27  }
   0xa   :  { %255 = dma.done.wait [#allocation3], 128  }
   0xb   :  { %256 = vsyncadd [#allocation3], 4294967168 }
   0xc   :  { %257 = dma.done.wait [#allocation6], 2064  }
   0xd   :  { %258 = vsyncadd [#allocation6], 4294965232  ;;  %v75_v0 = vld [vmem:[#allocation7 + $0x78] sm:$0xff]  ;;  %v74_v1 = vld [vmem:[#allocation7 + $0x70] sm:$0xff]  ;;  %s266_s0 = smov [#allocation8]   ;;  %s137_s30 = sshll.u32 %s302_s3, 4  ;;  %s138_s30 = int_to_ptr.hbm [resolvable:$true] %s137_s30 }
   0xe   :  { %76 = vmatpush.msra.mxu0 %v75_v0  ;;  %v73_v2 = vld [vmem:[#allocation7 + $0x68] sm:$0xff]  ;;  %v72_v3 = vld [vmem:[#allocation7 + $0x60] sm:$0xff]  ;;  %v71_v4 = vld [vmem:[#allocation7 + $0x58] sm:$0xff]  ;;  %s135_s2 = sshll.u32 %s266_s0, 4  ;;  %s136_s2 = int_to_ptr.vmem [resolvable:$true] %s135_s2 }
   0xf   :  { %v70_v5 = vld [vmem:[#allocation7 + $0x50] sm:$0xff]  ;;  %v69_v6 = vld [vmem:[#allocation7 + $0x48] sm:$0xff]  ;;  %v68_v7 = vld [vmem:[#allocation7 + $0x40] sm:$0xff] }
  0x10   :  { %77 = vmatpush.msra.mxu0 %v74_v1  ;;  %v67_v8 = vld [vmem:[#allocation7 + $0x38] sm:$0xff]  ;;  %v66_v9 = vld [vmem:[#allocation7 + $0x30] sm:$0xff]  ;;  %v65_v10 = vld [vmem:[#allocation7 + $0x28] sm:$0xff] }
  0x11   :  { %v64_v11 = vld [vmem:[#allocation7 + $0x20] sm:$0xff]  ;;  %v63_v12 = vld [vmem:[#allocation7 + $0x18] sm:$0xff]  ;;  %v62_v13 = vld [vmem:[#allocation7 + $0x10] sm:$0xff] }
  0x12   :  { %78 = vmatpush.msra.mxu0 %v73_v2  ;;  %v58_v14 = vld [vmem:[#allocation2] sm:$0xff]  ;;  %v61_v15 = vld [vmem:[#allocation7 + $0x8] sm:$0xff]  ;;  %v60_v16 = vld [vmem:[#allocation7] sm:$0xff] }
  0x13   :  { %v59_v17 = vmul.f32 %v58_v14, %v58_v14  ;;  %v154_v39 = vld [vmem:[#allocation5] ss:$0 sm:$0xff] }
  0x14   :  { %79 = vmatpush.msra.mxu0 %v72_v3 }
  0x16   :  { %80 = vmatpush.msra.mxu0 %v71_v4 }
  0x18   :  { %81 = vmatpush.msra.mxu0 %v70_v5 }
  0x1a   :  { %82 = vmatpush.msra.mxu0 %v69_v6 }
  0x1c   :  { %83 = vmatpush.msra.mxu0 %v68_v7 }
  0x1e   :  { %84 = vmatpush.msra.mxu0 %v67_v8 }
  0x20   :  { %85 = vmatpush.msra.mxu0 %v66_v9 }
  0x22   :  { %86 = vmatpush.msra.mxu0 %v65_v10 }
  0x24   :  { %87 = vmatpush.msra.mxu0 %v64_v11 }
  0x26   :  { %88 = vmatpush.msra.mxu0 %v63_v12 }
  0x28   :  { %89 = vmatpush.msra.mxu0 %v62_v13 }
  0x2a   :  { %90 = vmatpush.msra.mxu0 %v61_v15 }
  0x2c   :  { %91 = vmatpush.msra.mxu0 %v60_v16 }
  0x2d   :  { %92 = vmatmul.f32.vlgmr.msra.gmra.mxu0 %v59_v17 }
  0xaa   :  { %v93_v18 = vpop.f32.mrf.mxu0 }
  0xab   :  { %155 = vrsqrt.f32 %v93_v18  ;;  %vm103_vm0 = vcmp.eq.f32.partialorder %v93_v18, inf  ;;  %v106_v26 = vand.u32 2147483648, %v93_v18  ;;  %vm105_vm1 = vcmp.eq.f32.partialorder %v93_v18, 0.0 }
  0xb1   :  { %v156_v19 = vpop.eup %155 }
  0xb2   :  { %v97_v20 = vmul.f32 %v156_v19, %v93_v18 }
  0xb4   :  { %v98_v21 = vmul.f32 %v156_v19, %v97_v20 }
  0xb6   :  { %v99_v22 = vmul.f32 0.5, %v98_v21 }
  0xb8   :  { %v100_v23 = vsub.f32 1.5, %v99_v22 }
  0xba   :  { %v101_v24 = vmul.f32 %v156_v19, %v100_v23 }
  0xbc   :  { %v102_v25 = vmul.f32 %v101_v24, %v93_v18 }
  0xbe   :  { %v104_v27 = vsel %vm103_vm0, %v93_v18, %v102_v25 }
  0xbf   :  { %v107_v28 = vsel %vm105_vm1, %v106_v26, %v104_v27 }
  0xc0   :  { %v109_v29 = vadd.f32 1e-08, %v107_v28 }
  0xc2   :  { %157 = vrcp.f32 %v109_v29  ;;  %v121_v33 = vand.u32 2147483648, %v109_v29  ;;  %v119_v35 = vand.u32 2147483647, %v109_v29  ;;  %vm115_vm3 = vweird.f32 %v109_v29 }
  0xc4   :  { %v122_v37 = vor.u32 1.1754944e-38, %v121_v33  ;;  %vm120_vm5 = vcmp.eq.f32.partialorder %v119_v35, 8.507059e+37 }
  0xc8   :  { %v158_v30 = vpop.eup %157 }
  0xc9   :  { %v111_v31 = vmul.f32 %v158_v30, %v109_v29  ;;  %vm116_vm2 = vweird.f32 %v158_v30 }
  0xca   :  { %vm117_vm4 = vmor %vm115_vm3, %vm116_vm2 }
  0xcb   :  { %v112_v32 = vsub.f32 1.0, %v111_v31 }
  0xcd   :  { %v113_v34 = vmul.f32 %v158_v30, %v112_v32 }
  0xcf   :  { %v114_v36 = vadd.f32 %v158_v30, %v113_v34 }
  0xd1   :  { %v118_v38 = vsel %vm117_vm4, %v158_v30, %v114_v36 }
  0xd2   :  { %v123_v40 = vsel %vm120_vm5, %v122_v37, %v118_v38 }
  0xd3   :  { %v124_v41 = vmul.f32 %v123_v40, %v58_v14 }
  0xd5   :  { %v128_v42 = vmul.f32 %v154_v39, %v124_v41 }
  0xd7   :  { %129 = vst [vmem:[#allocation8] sm:$0xff] %v128_v42 }
  0xd8   :  { %140 = dma.vmem_to_hbm [thread:$0]  %s136_s2, 128, %s138_s30, [#allocation4]  }
  0xd9   :  { %259 = dma.done.wait [#allocation4], 128  }
  0xda   :  { %260 = vsyncadd [#allocation4], 4294967168 }
  0xdb   :  { %145 = vsyncpa [#allocation3], 1 }
  0xdc   :  { %146 = vsyncpa [#allocation6], 1 }
  0xdd   :  { %147 = vsyncpa [#allocation4], 1 }

</bundles_post_ra>
